<compile_context>
chip_gen: v5e
topology: v5e:2x2
jax: 0.10.0
libtpu: 0.0.40
codegen_flags: <defaults>
</compile_context>

<pallas_src>
import jax
import jax.numpy as jnp
from jax.experimental import pallas as pl
from jax.experimental.pallas import tpu as pltpu

LANE = 128
_TARGET_BLOCK_BYTES = 2 * 1024 * 1024  # ~2 MiB per operand per grid step


def _max_kernel(x_ref, y_ref, o_ref):
    # Pure VPU elementwise max on the whole VMEM tile.
    o_ref[...] = jnp.maximum(x_ref[...], y_ref[...])


def _sublane_for_dtype(dtype):
    itemsize = jnp.dtype(dtype).itemsize
    return {4: 8, 2: 16, 1: 32}.get(itemsize, 8)


def _bulk_max_2d(x2, y2):
    """Elementwise max over a lane-dense (rows, 128) slab."""
    rows, lane = x2.shape
    dtype = x2.dtype
    itemsize = jnp.dtype(dtype).itemsize
    sublane = _sublane_for_dtype(dtype)

    # ~2 MiB per operand per block, rounded to the packed sublane tile.
    tile_rows = max(sublane, _TARGET_BLOCK_BYTES // (lane * itemsize))
    tile_rows -= tile_rows % sublane

    if rows <= tile_rows:
        # Single full-array block: block dim == array dim is always legal,
        # and skips per-step pipeline overhead for small inputs.
        block_rows = rows
    else:
        block_rows = tile_rows
    grid = (pl.cdiv(rows, block_rows),)  # partial last block handled by Pallas

    return pl.pallas_call(
        _max_kernel,
        out_shape=jax.ShapeDtypeStruct((rows, lane), dtype),
        grid_spec=pltpu.PrefetchScalarGridSpec(
            num_scalar_prefetch=0,
            grid=grid,
            in_specs=[
                pl.BlockSpec((block_rows, lane), lambda i: (i, 0)),
                pl.BlockSpec((block_rows, lane), lambda i: (i, 0)),
            ],
            out_specs=pl.BlockSpec((block_rows, lane), lambda i: (i, 0)),
        ),
        compiler_params=pltpu.CompilerParams(
            # parallel axis -> megacore sharding on v7x; no-op on v5e/v6e.
            dimension_semantics=("parallel",),
            # raise v5e's 16 MiB scoped default; safe on all generations.
            vmem_limit_bytes=32 * 1024 * 1024,
        ),
        cost_estimate=pl.CostEstimate(
            flops=rows * lane,
            transcendentals=0,
            bytes_accessed=3 * rows * lane * itemsize,
        ),
    )(x2, y2)


def pallas_max(x, y):
    """Elementwise maximum of two same-shaped arrays (torch.max(x, y))."""
    assert x.shape == y.shape, "shapes must match (no broadcasting needed here)"
    assert x.dtype == y.dtype
    orig_shape = x.shape
    n = x.size
    if n == 0:
        return jnp.maximum(x, y)

    xf = x.reshape(-1)
    yf = y.reshape(-1)

    rem = n % LANE
    n_bulk = n - rem
    if n_bulk == 0:
        # Fewer than 128 elements: kernel launch is pure overhead.
        return jnp.maximum(x, y)

    rows = n_bulk // LANE
    if rem == 0:
        x_bulk, y_bulk = xf, yf
    else:
        x_bulk, y_bulk = xf[:n_bulk], yf[:n_bulk]

    out2 = _bulk_max_2d(x_bulk.reshape(rows, LANE), y_bulk.reshape(rows, LANE))
    out_flat = out2.reshape(-1)

    if rem:
        # Tiny unaligned tail handled outside the kernel (one small copy).
        tail = jnp.maximum(xf[n_bulk:], yf[n_bulk:])
        out_flat = jnp.concatenate([out_flat, tail])

    return out_flat.reshape(orig_shape)


if __name__ == "__main__":
    key = jax.random.PRNGKey(0)
    kx, ky = jax.random.split(key)
    # NCHW activations, as the Max module would see in a conv net.
    x = jax.random.normal(kx, (2, 4, 16, 16), dtype=jnp.float32)
    y = jax.random.normal(ky, (2, 4, 16, 16), dtype=jnp.float32)

    out = pallas_max(x, y)
    jax.block_until_ready(out)

    ref = jnp.maximum(x, y)
    assert out.shape == ref.shape
    assert jnp.array_equal(out, ref)

    # Also exercise a lane-unaligned shape to cover the tail path.
    x2 = jax.random.normal(kx, (3, 5, 7), dtype=jnp.float32)
    y2 = jax.random.normal(ky, (3, 5, 7), dtype=jnp.float32)
    out2 = pallas_max(x2, y2)
    jax.block_until_ready(out2)
    assert jnp.array_equal(out2, jnp.maximum(x2, y2))

    print("KERNEL_OK")
</pallas_src>

<mosaic_0001>
module attributes {stable_mosaic.version = 11 : i64} {
  func.func @_max_kernel(%arg0: i32, %arg1: memref<16x128xf32, #tpu.memory_space<vmem>>, %arg2: memref<16x128xf32, #tpu.memory_space<vmem>>, %arg3: memref<16x128xf32, #tpu.memory_space<vmem>>) attributes {dimension_semantics = [#tpu.dimension_semantics<parallel>], iteration_bounds = array<i64: 1>, scalar_prefetch = 0 : i64, scratch_operands = 0 : i64, tpu.core_type = #tpu.core_type<tc>, window_params = [{transform_indices = @transform_0, window_bounds = array<i64: 16, 128>}, {transform_indices = @transform_1, window_bounds = array<i64: 16, 128>}, {transform_indices = @transform_2, window_bounds = array<i64: 16, 128>}]} {
    %c0 = arith.constant 0 : index
    %c0_0 = arith.constant 0 : index
    %0 = vector.load %arg1[%c0, %c0_0] : memref<16x128xf32, #tpu.memory_space<vmem>>, vector<16x128xf32>
    %c0_1 = arith.constant 0 : index
    %c0_2 = arith.constant 0 : index
    %1 = vector.load %arg2[%c0_1, %c0_2] : memref<16x128xf32, #tpu.memory_space<vmem>>, vector<16x128xf32>
    %2 = arith.maximumf %0, %1 : vector<16x128xf32>
    %c0_3 = arith.constant 0 : index
    %c0_4 = arith.constant 0 : index
    %3 = vector.load %arg3[%c0_3, %c0_4] : memref<16x128xf32, #tpu.memory_space<vmem>>, vector<16x128xf32>
    tpu.vector_store %arg3[%c0_3, %c0_4], %2 {strides = array<i32>} : memref<16x128xf32, #tpu.memory_space<vmem>>, vector<16x128xf32>,
    return
  }
  func.func @transform_0(%arg0: i32) -> (i32, i32) {
    %c0_i32 = arith.constant 0 : i32
    %c0_i32_0 = arith.constant 0 : i32
    return %arg0, %c0_i32 : i32, i32
  }
  func.func @transform_1(%arg0: i32) -> (i32, i32) {
    %c0_i32 = arith.constant 0 : i32
    %c0_i32_0 = arith.constant 0 : i32
    return %arg0, %c0_i32 : i32, i32
  }
  func.func @transform_2(%arg0: i32) -> (i32, i32) {
    %c0_i32 = arith.constant 0 : i32
    %c0_i32_0 = arith.constant 0 : i32
    return %arg0, %c0_i32 : i32, i32
  }
}

</mosaic_0001>

<bundles_post_ra>
// kernel: tpu_custom_call.1
= control target key start
LH: loop header
LB: loop body
LE: loop exit
PB: predicated region body
PF: predicated region fallthrough
CT: control target
= control target key end

     0   :  { %7 = vsyncpa [#allocation3], 0  ;;  %s184_s0 = inlined_call_operand.hbm [shape: f32[16,128], index: 0, kind: input, shape index: {}]   ;;  %s185_s1 = inlined_call_operand.hbm [shape: f32[16,128], index: 1, kind: input, shape index: {}]   ;;  %s186_s2 = inlined_call_operand.hbm [shape: f32[16,128], index: 2, kind: output, shape index: {}]  }
   0x1   :  { %8 = vsyncpa [#allocation6], 0 }
   0x2   :  { %9 = vsyncpa [#allocation4], 0  ;;  %s14_s11 = sshll.u32 %s184_s0, 4  ;;  %s155_s12 = smov [#allocation2]   ;;  %s15_s11 = int_to_ptr.hbm [resolvable:$true] %s14_s11 }
   0x3   :  { %s16_s13 = sshll.u32 %s155_s12, 4  ;;  %s27_s16 = sshll.u32 %s185_s1, 4  ;;  %s17_s13 = int_to_ptr.vmem [resolvable:$true] %s16_s13  ;;  %s28_s16 = int_to_ptr.hbm [resolvable:$true] %s27_s16 }
   0x4   :  { %s156_s17 = smov 128   ;;  %s157_s18 = smov 8  }
   0x5   :  { %22 = dma.hbm_to_vmem [thread:$0]  %s15_s11, 256, %s17_s13, [#allocation3], %s156_s17, %s156_s17, %s157_s18  }
   0x6   :  { %s158_s19 = smov [#allocation5]  }
   0x7   :  { %s29_s20 = sshll.u32 %s158_s19, 4  ;;  %s30_s20 = int_to_ptr.vmem [resolvable:$true] %s29_s20 }
   0x8   :  { %35 = dma.hbm_to_vmem [thread:$0]  %s28_s16, 256, %s30_s20, [#allocation6], %s156_s17, %s156_s17, %s157_s18  }
   0x9   :  { %149 = dma.done.wait [#allocation3], 256  }
   0xa   :  { %150 = vsyncadd [#allocation3], 4294967040 }
   0xb   :  { %151 = dma.done.wait [#allocation6], 256  }
   0xc   :  { %152 = vsyncadd [#allocation6], 4294967040  ;;  %s159_s0 = smov [#allocation7]   ;;  %s58_s24 = sshll.u32 %s186_s2, 4  ;;  %v44_v0 = vld [vmem:[#allocation2] sm:$0xff]  ;;  %v46_v1 = vld [vmem:[#allocation5] sm:$0xff]  ;;  %s59_s24 = int_to_ptr.hbm [resolvable:$true] %s58_s24 }
   0xd   :  { %s56_s21 = sshll.u32 %s159_s0, 4  ;;  %v45_v2 = vld [vmem:[#allocation2 + $0x8] sm:$0xff]  ;;  %v48_v3 = vmax.f32 %v44_v0, %v46_v1  ;;  %v47_v4 = vld [vmem:[#allocation5 + $0x8] sm:$0xff]  ;;  %s57_s21 = int_to_ptr.vmem [resolvable:$true] %s56_s21 }
   0xe   :  { %v49_v5 = vmax.f32 %v45_v2, %v47_v4 }
   0xf   :  { %50 = vst [vmem:[#allocation7] sm:$0xff] %v48_v3 }
  0x10   :  { %51 = vst [vmem:[#allocation7 + $0x8] sm:$0xff] %v49_v5 }
  0x11   :  { %64 = dma.vmem_to_hbm [thread:$0]  %s57_s21, 256, %s59_s24, [#allocation4], %s156_s17, %s156_s17, %s157_s18  }
  0x12   :  { %153 = dma.done.wait [#allocation4], 256  }
  0x13   :  { %154 = vsyncadd [#allocation4], 4294967040 }
  0x14   :  { %69 = vsyncpa [#allocation3], 1 }
  0x15   :  { %70 = vsyncpa [#allocation6], 1 }
  0x16   :  { %71 = vsyncpa [#allocation4], 1 }

</bundles_post_ra>
